<compile_context>
chip_gen: v5e
topology: v5e:2x2
jax: 0.10.0
libtpu: 0.0.40
codegen_flags: <defaults>
</compile_context>

<pallas_src>
import functools

import jax
import jax.numpy as jnp
from jax.experimental import pallas as pl
from jax.experimental.pallas import tpu as pltpu


# --------------------------- generation-aware sizing ---------------------------

def _tpu_vmem_capacity_bytes():
    cap = 128 * 1024 * 1024
    try:
        info = pltpu.get_tpu_info()
        cap = int(getattr(info, "vmem_capacity_bytes", cap))
    except Exception:
        pass
    return cap


def _vmem_limit_bytes():
    cap = _tpu_vmem_capacity_bytes()
    # <= half of physical VMEM (v7x: 32 of 64 MiB), capped at 48 MiB on the
    # 128 MiB parts; never below 16 MiB so multi-MiB double-buffered tiles fit.
    return int(min(48 * 1024 * 1024, max(cap // 2, 16 * 1024 * 1024)))


def _per_buffer_target_bytes():
    cap = _tpu_vmem_capacity_bytes()
    # ~8 MiB tiles on v5e/v6e (128 MiB VMEM), ~4 MiB on v7x (64 MiB VMEM).
    return 8 * 1024 * 1024 if cap >= 96 * 1024 * 1024 else 4 * 1024 * 1024


def _pick_tile(total, target, align=8):
    """Largest divisor of `total` that is a multiple of `align` and <= target.

    Falls back to `total` itself (a block dim equal to the full array dim is
    always legal, regardless of (8,128) alignment).
    """
    best = None
    cap = min(total, max(target, align))
    d = align
    while d <= cap:
        if total % d == 0:
            best = d
        d += align
    return best if best is not None else total


# --------------- pass 1: sum(|x|) over c (lane-dense), finish in JAX ---------------

def _abs_sum_kernel(x_ref, o_ref):
    # x_ref: (1, tile_c, t*v) lane-dense; o_ref: (1, 1, t*v) resident f32 acc.
    @pl.when(pl.program_id(2) == 0)
    def _init():
        o_ref[...] = jnp.zeros_like(o_ref)

    o_ref[...] += jnp.sum(
        jnp.abs(x_ref[...]).astype(jnp.float32), axis=1, keepdims=True
    )


def _abs_sum(x):
    """Returns sum(|x|) over (c, t) as an (n, v) float32 array."""
    n, c, t, v = x.shape
    tv = t * v
    x2 = x.reshape(n, c, tv)                      # contiguous -> free reshape
    itemsize = x.dtype.itemsize

    # Split the c reduction into `split` parallel partial sums so megacore
    # parts (v7x: 2 TCs) still get >= 2 parallel grid points when n == 1.
    split = 2 if (n < 2 and c % 16 == 0) else 1
    c_per = c // split

    target_c = max(8, _per_buffer_target_bytes() // max(tv * itemsize, 1))
    tile_c = _pick_tile(c_per, target_c, 8)
    blocks_per_split = c_per // tile_c
    grid = (n, split, blocks_per_split)

    out = pl.pallas_call(
        _abs_sum_kernel,
        out_shape=jax.ShapeDtypeStruct((n * split, 1, tv), jnp.float32),
        grid=grid,
        in_specs=[
            pl.BlockSpec(
                (1, tile_c, tv),
                lambda i, s, j: (i, s * blocks_per_split + j, 0),
            )
        ],
        out_specs=pl.BlockSpec((1, 1, tv), lambda i, s, j: (i * split + s, 0, 0)),
        compiler_params=pltpu.CompilerParams(
            dimension_semantics=("parallel", "parallel", "arbitrary"),
            vmem_limit_bytes=_vmem_limit_bytes(),
        ),
        cost_estimate=pl.CostEstimate(
            flops=2 * n * c * tv,
            transcendentals=0,
            bytes_accessed=x.size * itemsize + n * split * tv * 4,
        ),
    )(x2)

    # Tiny tail reduction (split axis + t) in plain JAX: n*split*t*v elems.
    return out.reshape(n, split, t, v).sum(axis=(1, 2))


# --------------------- pass 2: lane-dense elementwise apply ---------------------

def _apply_kernel(x_ref, m_ref, o_ref):
    # x_ref: (1, tile_c, t*v)   m_ref: (1, 1, t*v) pre-scaled mask row.
    # Single broadcasted multiply -> kernel stays strictly vld/vst bound.
    o_ref[...] = (x_ref[...] * m_ref[...]).astype(o_ref.dtype)


def _apply_mask(x, mask_scaled):
    """out = x * mask_scaled[n, v] broadcast over (c, t); lane-dense tiling."""
    n, c, t, v = x.shape
    tv = t * v
    x2 = x.reshape(n, c, tv)                      # free reshape, large lane axis
    itemsize = x.dtype.itemsize

    # Pre-tile the (n, v) mask along t (tiny: n*t*v floats) so the in-kernel
    # broadcast is constant per lane position -> one vmul per vreg.
    m_full = jnp.broadcast_to(
        mask_scaled.astype(jnp.float32)[:, None, :], (n, t, v)
    ).reshape(n, 1, tv)

    target_c = max(8, _per_buffer_target_bytes() // max(tv * itemsize, 1))
    if n < 2 and c % 16 == 0:
        target_c = min(target_c, c // 2)          # keep >= 2 parallel c-blocks (v7x)
    tile_c = _pick_tile(c, target_c, 8)
    grid = (n, c // tile_c)

    out = pl.pallas_call(
        _apply_kernel,
        out_shape=jax.ShapeDtypeStruct((n, c, tv), x.dtype),
        grid=grid,
        in_specs=[
            pl.BlockSpec((1, tile_c, tv), lambda i, j: (i, j, 0)),
            pl.BlockSpec((1, 1, tv), lambda i, j: (i, 0, 0)),
        ],
        out_specs=pl.BlockSpec((1, tile_c, tv), lambda i, j: (i, j, 0)),
        compiler_params=pltpu.CompilerParams(
            dimension_semantics=("parallel", "parallel"),
            vmem_limit_bytes=_vmem_limit_bytes(),
        ),
        cost_estimate=pl.CostEstimate(
            flops=n * c * tv,
            transcendentals=0,
            bytes_accessed=2 * x.size * itemsize + n * tv * 4,
        ),
    )(x2, m_full)
    return out.reshape(n, c, t, v)


# --------------------------------- wrapper ---------------------------------

def _dropblock_ske_impl(x, A, u, *, keep_prob, num_point, block_size=7,
                        training=True):
    """JAX/Pallas equivalent of DropBlock_Ske.forward.

    x: (n, c, t, v), A: (v, v), u: (n, v) uniform variates standing in for
    torch.bernoulli's internal RNG.
    """
    del block_size  # unused by the reference forward as well
    if (not training) or keep_prob == 1:
        return x

    if num_point == 25:
        gamma = (1.0 - keep_prob) / (1 + 1.92)
    elif num_point == 200:
        gamma = (1.0 - keep_prob) / (1 + 19)
    else:
        gamma = (1.0 - keep_prob) / (1 + 1.92)    # 'undefined skeleton graph'

    n, c, t, v = x.shape
    assert v == num_point, "num_point must equal the joint dimension v"

    # --- pass 1 (Pallas): per-(n, v) abs-sum reduction over (c, t) ---
    sum_abs = _abs_sum(x)                                   # (n, v) f32

    # --- tiny glue math in plain JAX (global normalization + 25x25 mask) ---
    # (Same div-by-zero behaviour as the PyTorch reference for all-zero input
    #  or all-joints-dropped masks.)
    input_abs = sum_abs / float(c * t)                      # mean over (t), (c)
    input_abs = input_abs / jnp.sum(input_abs) * float(n * v)
    p = jnp.minimum(input_abs * gamma, 1.0)                 # clamp(max=1.0)
    m_seed = (u < p).astype(jnp.float32)                    # bernoulli draw
    M = jnp.dot(m_seed, A.astype(jnp.float32))              # (n, v)
    M = jnp.where(M > 0.001, 1.0, 0.0)                      # >0.001 -> 1, <0.5 -> 0
    mask = 1.0 - M
    scale = float(n * v) / jnp.sum(mask)                    # numel / sum
    mask_scaled = mask * scale                              # pre-multiplied

    # --- pass 2 (Pallas): lane-dense tiled apply ---
    return _apply_mask(x, mask_scaled)


# One jit region: fuses the tiny glue ops between the two pallas_calls and
# lets XLA overlap mask prep with pass 2's first DMA.
dropblock_ske = jax.jit(
    _dropblock_ske_impl,
    static_argnames=("keep_prob", "num_point", "block_size", "training"),
)


if __name__ == "__main__":
    key = jax.random.PRNGKey(0)
    kx, ku = jax.random.split(key)

    # Small shapes consistent with the module: num_point = 25 joints.
    n, c, t, v = 2, 4, 16, 25
    x = jax.random.normal(kx, (n, c, t, v), dtype=jnp.float32)

    # Deterministic synthetic adjacency: self + immediate neighbours.
    idx = jnp.arange(v)
    A = (jnp.abs(idx[:, None] - idx[None, :]) <= 1).astype(jnp.float32)

    # TODO(synk): torch.bernoulli's exact RNG stream is not reproducible; we
    # substitute jax.random uniforms (same distribution) compared against p.
    u = jax.random.uniform(ku, (n, v), dtype=jnp.float32)

    keep_prob = 0.9
    out = dropblock_ske(x, A, u, keep_prob=keep_prob, num_point=v, training=True)
    out = jax.block_until_ready(out)
    assert out.shape == (n, c, t, v) and out.dtype == x.dtype

    # Stage-wise correctness check against pure-jnp (uses the kernel's own
    # reduction for the mask so the bernoulli thresholds are identical).
    sum_abs_k = _abs_sum(x)
    sum_abs_r = jnp.sum(jnp.abs(x), axis=(1, 2))
    assert jnp.allclose(sum_abs_k, sum_abs_r, rtol=1e-5, atol=1e-4)

    gamma = (1.0 - keep_prob) / (1 + 1.92)
    ia = sum_abs_k / float(c * t)
    ia = ia / jnp.sum(ia) * float(n * v)
    p = jnp.minimum(ia * gamma, 1.0)
    m_seed = (u < p).astype(jnp.float32)
    M = jnp.where(jnp.dot(m_seed, A) > 0.001, 1.0, 0.0)
    mask = 1.0 - M
    ref = x * (mask * (float(n * v) / jnp.sum(mask)))[:, None, None, :]
    assert jnp.allclose(out, ref, rtol=1e-5, atol=1e-5)

    print("KERNEL_OK")
</pallas_src>

<mosaic_0001>
module attributes {stable_mosaic.version = 11 : i64} {
  func.func @_abs_sum_kernel(%arg0: i32, %arg1: i32, %arg2: i32, %arg3: memref<1x4x400xf32, #tpu.memory_space<vmem>>, %arg4: memref<1x1x400xf32, #tpu.memory_space<vmem>>) attributes {dimension_semantics = [#tpu.dimension_semantics<parallel>, #tpu.dimension_semantics<parallel>, #tpu.dimension_semantics<arbitrary>], iteration_bounds = array<i64: 2, 1, 1>, scalar_prefetch = 0 : i64, scratch_operands = 0 : i64, tpu.core_type = #tpu.core_type<tc>, window_params = [{transform_indices = @transform_0, window_bounds = array<i64: 1, 4, 400>}, {transform_indices = @transform_1, window_bounds = array<i64: 1, 1, 400>}]} {
    %c0_i32 = arith.constant 0 : i32
    %0 = arith.cmpi eq, %arg2, %c0_i32 : i32
    %1 = arith.extui %0 : i1 to i32
    %c0_i32_0 = arith.constant 0 : i32
    %2 = arith.cmpi ne, %1, %c0_i32_0 : i32
    scf.if %2 {
      %cst_9 = arith.constant 0.000000e+00 : f32
      %10 = vector.broadcast %cst_9 : f32 to vector<1x1x400xf32>
      %c0_10 = arith.constant 0 : index
      %c0_11 = arith.constant 0 : index
      %c0_12 = arith.constant 0 : index
      %11 = vector.load %arg4[%c0_10, %c0_11, %c0_12] : memref<1x1x400xf32, #tpu.memory_space<vmem>>, vector<1x1x400xf32>
      tpu.vector_store %arg4[%c0_10, %c0_11, %c0_12], %10 {strides = array<i32>} : memref<1x1x400xf32, #tpu.memory_space<vmem>>, vector<1x1x400xf32>,
    } else {
    }
    %c0 = arith.constant 0 : index
    %c0_1 = arith.constant 0 : index
    %c0_2 = arith.constant 0 : index
    %3 = vector.load %arg4[%c0, %c0_1, %c0_2] : memref<1x1x400xf32, #tpu.memory_space<vmem>>, vector<1x1x400xf32>
    %c0_3 = arith.constant 0 : index
    %c0_4 = arith.constant 0 : index
    %c0_5 = arith.constant 0 : index
    %4 = vector.load %arg3[%c0_3, %c0_4, %c0_5] : memref<1x4x400xf32, #tpu.memory_space<vmem>>, vector<1x4x400xf32>
    %5 = math.absf %4 : vector<1x4x400xf32>
    %cst = arith.constant dense<0.000000e+00> : vector<1x400xf32>
    %6 = vector.multi_reduction <add>, %5, %cst [1] : vector<1x4x400xf32> to vector<1x400xf32>
    %7 = vector.shape_cast %6 : vector<1x400xf32> to vector<1x1x400xf32>
    %8 = arith.addf %3, %7 : vector<1x1x400xf32>
    %c0_6 = arith.constant 0 : index
    %c0_7 = arith.constant 0 : index
    %c0_8 = arith.constant 0 : index
    %9 = vector.load %arg4[%c0_6, %c0_7, %c0_8] : memref<1x1x400xf32, #tpu.memory_space<vmem>>, vector<1x1x400xf32>
    tpu.vector_store %arg4[%c0_6, %c0_7, %c0_8], %8 {strides = array<i32>} : memref<1x1x400xf32, #tpu.memory_space<vmem>>, vector<1x1x400xf32>,
    return
  }
  func.func @transform_0(%arg0: i32, %arg1: i32, %arg2: i32) -> (i32, i32, i32) {
    %c1_i32 = arith.constant 1 : i32
    %0 = arith.muli %arg1, %c1_i32 : i32
    %1 = arith.addi %0, %arg2 : i32
    %c0_i32 = arith.constant 0 : i32
    %c0_i32_0 = arith.constant 0 : i32
    return %arg0, %1, %c0_i32 : i32, i32, i32
  }
  func.func @transform_1(%arg0: i32, %arg1: i32, %arg2: i32) -> (i32, i32, i32) {
    %c1_i32 = arith.constant 1 : i32
    %0 = arith.muli %arg0, %c1_i32 : i32
    %1 = arith.addi %0, %arg1 : i32
    %c0_i32 = arith.constant 0 : i32
    %c0_i32_0 = arith.constant 0 : i32
    %c0_i32_1 = arith.constant 0 : i32
    return %1, %c0_i32, %c0_i32_0 : i32, i32, i32
  }
}

module attributes {stable_mosaic.version = 11 : i64} {
  func.func @_apply_kernel(%arg0: i32, %arg1: i32, %arg2: memref<1x4x400xf32, #tpu.memory_space<vmem>>, %arg3: memref<1x1x400xf32, #tpu.memory_space<vmem>>, %arg4: memref<1x4x400xf32, #tpu.memory_space<vmem>>) attributes {dimension_semantics = [#tpu.dimension_semantics<parallel>, #tpu.dimension_semantics<parallel>], iteration_bounds = array<i64: 2, 1>, scalar_prefetch = 0 : i64, scratch_operands = 0 : i64, tpu.core_type = #tpu.core_type<tc>, window_params = [{transform_indices = @transform_0, window_bounds = array<i64: 1, 4, 400>}, {transform_indices = @transform_1, window_bounds = array<i64: 1, 1, 400>}, {transform_indices = @transform_2, window_bounds = array<i64: 1, 4, 400>}]} {
    %c0 = arith.constant 0 : index
    %c0_0 = arith.constant 0 : index
    %c0_1 = arith.constant 0 : index
    %0 = vector.load %arg2[%c0, %c0_0, %c0_1] : memref<1x4x400xf32, #tpu.memory_space<vmem>>, vector<1x4x400xf32>
    %c0_2 = arith.constant 0 : index
    %c0_3 = arith.constant 0 : index
    %c0_4 = arith.constant 0 : index
    %1 = vector.load %arg3[%c0_2, %c0_3, %c0_4] : memref<1x1x400xf32, #tpu.memory_space<vmem>>, vector<1x1x400xf32>
    %2 = vector.broadcast %1 : vector<1x1x400xf32> to vector<1x4x400xf32>
    %3 = arith.mulf %0, %2 : vector<1x4x400xf32>
    %c0_5 = arith.constant 0 : index
    %c0_6 = arith.constant 0 : index
    %c0_7 = arith.constant 0 : index
    %4 = vector.load %arg4[%c0_5, %c0_6, %c0_7] : memref<1x4x400xf32, #tpu.memory_space<vmem>>, vector<1x4x400xf32>
    tpu.vector_store %arg4[%c0_5, %c0_6, %c0_7], %3 {strides = array<i32>} : memref<1x4x400xf32, #tpu.memory_space<vmem>>, vector<1x4x400xf32>,
    return
  }
  func.func @transform_0(%arg0: i32, %arg1: i32) -> (i32, i32, i32) {
    %c0_i32 = arith.constant 0 : i32
    %c0_i32_0 = arith.constant 0 : i32
    return %arg0, %arg1, %c0_i32 : i32, i32, i32
  }
  func.func @transform_1(%arg0: i32, %arg1: i32) -> (i32, i32, i32) {
    %c0_i32 = arith.constant 0 : i32
    %c0_i32_0 = arith.constant 0 : i32
    %c0_i32_1 = arith.constant 0 : i32
    return %arg0, %c0_i32, %c0_i32_0 : i32, i32, i32
  }
  func.func @transform_2(%arg0: i32, %arg1: i32) -> (i32, i32, i32) {
    %c0_i32 = arith.constant 0 : i32
    %c0_i32_0 = arith.constant 0 : i32
    return %arg0, %arg1, %c0_i32 : i32, i32, i32
  }
}

</mosaic_0001>

<bundles_post_ra>
// kernel: _dropblock_ske_impl.2
= control target key start
LH: loop header
LB: loop body
LE: loop exit
PB: predicated region body
PF: predicated region fallthrough
CT: control target
= control target key end

     0   :  { %s385_s6 = smov 0   ;;  %s387_s7 = smov 0   ;;  %s431_s0 = inlined_call_operand.vmem [shape: f32[2,4,400], index: 0, kind: input, shape index: {}]   ;;  %s432_s1 = inlined_call_operand.vmem [shape: f32[2,1,400], index: 1, kind: output, shape index: {}]  }
   0x1   :  { %s389_s8 = smov 0  }
   0x2 LB: > { %s30_s9 = sadd.s32 1, %s368_s7  ;;  %p318_p0 = scmp.ge.s32.totalorder %s372_s8, 1  ;;  %s372_s8 = sphi %s389_s8, %s11_s8   ;;  %s368_s7 = sphi %s387_s7, %s436_s7   ;;  %s364_s6 = sphi %s385_s6, %s435_s6  }
   0x3   : > { %p32_p1 = scmp.ge.s32.totalorder %s30_s9, 2  ;;  %p118_p2 = scmp.lt.s32.totalorder %s372_s8, 3 }
   0x5   : > { %s438_s9 = smov (%p32_p1, %s30_s9), 0  ;;  %p119_p3 = pnand %p318_p0, %p118_p2 }
   0x6   : > { %p144_p4 = scmp.lt.s32.totalorder (!%p119_p3), %s364_s6, 1 }
   0x7   : > { %122 = sbr.rel (%p119_p3) target bundleno = 47 (0x2f), region = 24 }
   0xc   : > { %v164_v0 = vlaneseq  ;;  %s440_s6 = smov (!%p144_p4, %s364_s6), 1  ;;  %v374_v4 = vmov 0.0   ;;  %vm187_vm1 = vcmask 1043456   ;;  %vm209_vm2 = vcmask 125952  }
   0xd   : > { %s324_s10 = sshll.u32 %s440_s6, 4  ;;  %s321_s11 = sshll.u32 %s440_s6, 2  ;;  %vm224_vm3 = vcmask 1040384   ;;  %vm226_vm4 = vcmask 1042434   ;;  %vm228_vm5 = vcmask 1041408  }
   0xe   : > { %vm403_vm0 = vcmp.lt.s32.totalorder %v164_v0, 400  ;;  %s152_s14 = scalar_lea.vmem %s431_s0, %s324_s10  ;;  %s413_s17 = scalar_lea.vmem %s432_s1, %s321_s11 }
   0xf   : > { %v170_v2 = vld [vmem:[%s152_s14] sm:$0xff]  ;;  %v171_v3 = vld [vmem:[%s152_s14 + $0x8] sm:$0xff]  ;;  %168 = vst.msk [vmem:[%s413_s17] sm:$0xf] %vm403_vm0, %v374_v4 }
  0x10   : > { %v172_v5 = vand.u32 2147483647, %v170_v2  ;;  %v173_v6 = vand.u32 2147483647, %v171_v3 }
  0x12   : > { %176 = vst [vmem:[#allocation1] ss:$2 sm:$0xff] %v172_v5 }
  0x13   : > { %178 = vst [vmem:[#allocation1 + $0x10] ss:$2 sm:$0xff] %v173_v6 }
  0x16   : > { %v169_v42 = vld [vmem:[%s413_s17] sm:$0xf] }
  0x19   : > { %v179_v7 = vld.sshfl [vmem:[#allocation1] sm:$0xff pattern:$0x75316420]  ;;  %v180_v8 = vld.sshfl [vmem:[#allocation1 + $0x8] sm:$0xff pattern:$0x75316420] }
  0x1a   : > { %v181_v9 = vld.sshfl [vmem:[#allocation1 + $0x10] sm:$0xff pattern:$0x75316420]  ;;  %v182_v10 = vld.sshfl [vmem:[#allocation1 + $0x18] sm:$0xff pattern:$0x75316420] }
  0x1b   : > { %v188_v11 = vsel %vm187_vm1, %v179_v7, 0.0  ;;  %v195_v12 = vsel %vm187_vm1, %v180_v8, 0.0  ;;  %v202_v13 = vsel %vm187_vm1, %v181_v9, 0.0  ;;  %v210_v14 = vsel %vm209_vm2, %v182_v10, 0.0 }
  0x1c   : > { %v189_v15 = vrot.slane %v188_v11, 4  ;;  %v196_v16 = vrot.slane %v195_v12, 4  ;;  %v203_v17 = vrot.slane %v202_v13, 4  ;;  %v211_v18 = vrot.slane %v210_v14, 4 }
  0x1e   : > { %v190_v19 = vadd.f32 %v189_v15, %v188_v11  ;;  %v197_v20 = vadd.f32 %v196_v16, %v195_v12  ;;  %v204_v21 = vadd.f32 %v203_v17, %v202_v13  ;;  %v212_v22 = vadd.f32 %v211_v18, %v210_v14 }
  0x20   : > { %v191_v23 = vrot.slane %v190_v19, 2  ;;  %v198_v24 = vrot.slane %v197_v20, 2  ;;  %v205_v25 = vrot.slane %v204_v21, 2  ;;  %v213_v26 = vrot.slane %v212_v22, 2 }
  0x22   : > { %v192_v27 = vadd.f32 %v191_v23, %v190_v19  ;;  %v199_v28 = vadd.f32 %v198_v24, %v197_v20  ;;  %v206_v29 = vadd.f32 %v205_v25, %v204_v21  ;;  %v214_v30 = vadd.f32 %v213_v26, %v212_v22 }
  0x24   : > { %v193_v31 = vrot.slane %v192_v27, 1  ;;  %v200_v32 = vrot.slane %v199_v28, 1  ;;  %v207_v33 = vrot.slane %v206_v29, 1  ;;  %v215_v34 = vrot.slane %v214_v30, 1 }
  0x26   : > { %v201_v35 = vadd.f32 %v200_v32, %v199_v28  ;;  %v208_v36 = vadd.f32 %v207_v33, %v206_v29  ;;  %v216_v37 = vadd.f32 %v215_v34, %v214_v30  ;;  %v194_v38 = vadd.f32 %v193_v31, %v192_v27 }
  0x28   : > { %v221_v39 = vrot.slane %v201_v35, 7  ;;  %v222_v40 = vrot.slane %v208_v36, 6  ;;  %v223_v41 = vrot.slane %v216_v37, 5 }
  0x2a   : > { %v225_v43 = vsel %vm224_vm3, %v194_v38, %v221_v39  ;;  %v227_v44 = vsel %vm226_vm4, %v222_v40, %v223_v41 }
  0x2b   : > { %v229_v45 = vsel %vm228_vm5, %v225_v43, %v227_v44 }
  0x2c   : > { %v231_v46 = vadd.f32 %v229_v45, %v169_v42 }
  0x2e   : > { %236 = vst.msk [vmem:[%s413_s17] sm:$0xf] %vm403_vm0, %v231_v46 }
  0x2f PF: > { %s11_s8 = sadd.s32 1, %s372_s8   ;;  %s435_s6 = smov %s368_s7 }
  0x30   : > { %p8_p5 = scmp.ge.s32.totalorder %s11_s8, 4   ;;  %s436_s7 = smov %s438_s9 }
  0x32   :  { %10 = sbr.rel (!%p8_p5) target bundleno = 2 (0x2), region = 59 }

// kernel: _dropblock_ske_impl.3
= control target key start
LH: loop header
LB: loop body
LE: loop exit
PB: predicated region body
PF: predicated region fallthrough
CT: control target
= control target key end

     0   :  { %s399_s9 = smov 0   ;;  %s401_s10 = smov 0   ;;  %s435_s0 = inlined_call_operand.vmem [shape: f32[2,4,400], index: 0, kind: input, shape index: {}]   ;;  %s436_s1 = inlined_call_operand.vmem [shape: f32[2,1,400], index: 1, kind: input, shape index: {}]   ;;  %s437_s2 = inlined_call_operand.vmem [shape: f32[2,4,400], index: 2, kind: output, shape index: {}]  }
   0x1   :  { %s403_s11 = smov 0  }
   0x2 LB: > { %s24_s12 = sadd.s32 1, %s378_s10  ;;  %p326_p0 = scmp.ge.s32.totalorder %s382_s11, 1  ;;  %s382_s11 = sphi %s403_s11, %s12_s11   ;;  %s378_s10 = sphi %s401_s10, %s439_s10   ;;  %s374_s9 = sphi %s399_s9, %s438_s9  }
   0x3   : > { %p26_p1 = scmp.ge.s32.totalorder %s24_s12, 2  ;;  %p141_p2 = scmp.lt.s32.totalorder %s382_s11, 3 }
   0x5   : > { %s441_s12 = smov (%p26_p1, %s24_s12), 0  ;;  %p142_p3 = pnand %p326_p0, %p141_p2 }
   0x6   : > { %p175_p4 = scmp.lt.s32.totalorder (!%p142_p3), %s374_s9, 1 }
   0x7   : > { %145 = sbr.rel (%p142_p3) target bundleno = 25 (0x19), region = 28 }
   0xc   : > { %s443_s9 = smov (!%p175_p4, %s374_s9), 1  ;;  %vm207_vm0 = vcmask 1043456   ;;  %vm215_vm1 = vcmask 130052  }
   0xd   : > { %s334_s13 = sshll.u32 %s443_s9, 4  ;;  %s329_s14 = sshll.u32 %s443_s9, 2  ;;  %vm216_vm2 = vmor %vm215_vm1, %vm207_vm0 }
   0xe   : > { %s187_s17 = scalar_lea.vmem %s436_s1, %s329_s14  ;;  %s183_s20 = scalar_lea.vmem %s435_s0, %s334_s13 }
   0xf   : > { %v199_v0 = vld [vmem:[%s187_s17] sm:$0xf]  ;;  %v198_v6 = vld [vmem:[%s183_s20 + $0x8] sm:$0xff]  ;;  %s196_s23 = scalar_lea.vmem %s437_s2, %s334_s13 }
  0x10   : > { %v201_v1 = vperm.slane %v199_v0, 0  ;;  %v202_v2 = vperm.slane %v199_v0, 1  ;;  %v203_v3 = vperm.slane %v199_v0, 2  ;;  %v204_v4 = vperm.slane %v199_v0, 3  ;;  %v197_v5 = vld [vmem:[%s183_s20] sm:$0xff] }
  0x12   : > { %v205_v7 = vrot.slane %v202_v2, 4  ;;  %v206_v8 = vrot.slane %v204_v4, 4 }
  0x14   : > { %v208_v9 = vsel %vm207_vm0, %v201_v1, %v205_v7  ;;  %v209_v10 = vsel %vm207_vm0, %v203_v3, %v206_v8 }
  0x15   : > { %v212_v11 = vmul.f32 %v208_v9, %v197_v5  ;;  %v213_v12 = vmul.f32 %v209_v10, %v198_v6 }
  0x17   : > { %214 = vst [vmem:[%s196_s23] sm:$0xff] %v212_v11 }
  0x18   : > { %217 = vst.msk [vmem:[%s196_s23 + $0x8] sm:$0xff] %vm216_vm2, %v213_v12 }
  0x19 PF: > { %s12_s11 = sadd.s32 1, %s382_s11   ;;  %s438_s9 = smov %s378_s10 }
  0x1a   : > { %p9_p5 = scmp.ge.s32.totalorder %s12_s11, 4   ;;  %s439_s10 = smov %s441_s12 }
  0x1c   :  { %11 = sbr.rel (!%p9_p5) target bundleno = 2 (0x2), region = 61 }

</bundles_post_ra>
